<compile_context>
chip_gen: v6e
topology: v6e:2x2x1
jax: 0.10.0
libtpu: 0.0.40
codegen_flags: <defaults>
</compile_context>

<pallas_src>
import functools

import jax
import jax.numpy as jnp
from jax.experimental import pallas as pl
from jax.experimental.pallas import tpu as pltpu


def _double_q_kernel(obs_ref, act_ref, w1o_ref, w1a_ref, b_ref, w2_ref, w3_ref,
                     q_ref):
    """Fused forward of both Q-heads for one batch tile.

    obs_ref : (TM, obs_dim)        act_ref : (TM, action_dim)
    w1o_ref : (obs_dim, 2H)        w1a_ref : (action_dim, 2H)
    b_ref   : (3, 2H)   row 0 = b1 packed, row 1 = b2 packed, row 2 = b3 (lanes 0:2)
    w2_ref  : (2H, 2H)  block-diagonal     w3_ref : (2H, 2)  block-diagonal columns
    q_ref   : (TM, 2)   q[:, 0] = Q1, q[:, 1] = Q2
    """
    b = b_ref[...]  # (3, 2H), loaded once

    # Layer 1: obs/action contributions summed (replaces wrapper-side concat).
    h = (jnp.dot(obs_ref[...], w1o_ref[...], preferred_element_type=jnp.float32)
         + jnp.dot(act_ref[...], w1a_ref[...], preferred_element_type=jnp.float32)
         + b[0:1, :])
    h = jnp.maximum(h, 0.0)

    # Layer 2 (block-diagonal -> the two heads stay independent).
    h = jnp.dot(h, w2_ref[...], preferred_element_type=jnp.float32) + b[1:2, :]
    h = jnp.maximum(h, 0.0)

    # Output layer: lane-dense (TM, 2) result.
    q_ref[...] = (jnp.dot(h, w3_ref[...], preferred_element_type=jnp.float32)
                  + b[2:3, 0:2])


def _pack_params(params_q1, params_q2):
    """Pack the two heads' params into fused slabs (could be done once offline)."""
    H = params_q1["w2"].shape[0]
    zH = jnp.zeros((H, H), jnp.float32)
    z1 = jnp.zeros((H, 1), jnp.float32)

    w1_packed = jnp.concatenate([params_q1["w1"], params_q2["w1"]], axis=1)  # (D, 2H)
    w2_packed = jnp.concatenate(
        [jnp.concatenate([params_q1["w2"], zH], axis=1),
         jnp.concatenate([zH, params_q2["w2"]], axis=1)], axis=0)            # (2H, 2H)
    w3_packed = jnp.concatenate(
        [jnp.concatenate([params_q1["w3"], z1], axis=1),
         jnp.concatenate([z1, params_q2["w3"]], axis=1)], axis=0)            # (2H, 2)

    b1 = jnp.concatenate([params_q1["b1"], params_q2["b1"]], axis=1)         # (1, 2H)
    b2 = jnp.concatenate([params_q1["b2"], params_q2["b2"]], axis=1)         # (1, 2H)
    b3 = jnp.concatenate([params_q1["b3"], params_q2["b3"]], axis=1)         # (1, 2)
    b3 = jnp.pad(b3, ((0, 0), (0, 2 * H - 2)))
    b_slab = jnp.concatenate([b1, b2, b3], axis=0)                           # (3, 2H)

    return w1_packed, b_slab, w2_packed, w3_packed


def double_q_critic_forward(obs, action, params_q1, params_q2, *, max_tile=512):
    """JAX wrapper mirroring DoubleQCritic.forward.

    obs:    (B, obs_dim)     float32
    action: (B, action_dim)  float32
    params_q*: dict with w1 (D,H), b1 (1,H), w2 (H,H), b2 (1,H), w3 (H,1), b3 (1,1)
    returns (q1, q2), each (B, 1) float32
    """
    assert obs.shape[0] == action.shape[0]
    B, obs_dim = obs.shape
    action_dim = action.shape[1]
    H2 = 2 * params_q1["w2"].shape[0]

    w1_packed, b_slab, w2_packed, w3_packed = _pack_params(params_q1, params_q2)
    # Split W1 by input source so the kernel never needs a concatenated obs/action.
    w1_obs = w1_packed[:obs_dim]     # (obs_dim, 2H)
    w1_act = w1_packed[obs_dim:]     # (action_dim, 2H)

    # Batch tiling: one block if small, else 512-row tiles (pad batch to a multiple).
    if B <= max_tile:
        tm = B                       # full-extent block: always layout-legal
        b_pad = B
    else:
        tm = max_tile                # multiple of 8 -> legal sublane tile
        b_pad = pl.cdiv(B, tm) * tm
    if b_pad != B:
        pad = b_pad - B
        obs_p = jnp.pad(obs, ((0, pad), (0, 0)))
        act_p = jnp.pad(action, ((0, pad), (0, 0)))
    else:
        obs_p, act_p = obs, action

    grid = (b_pad // tm,)

    q = pl.pallas_call(
        _double_q_kernel,
        out_shape=jax.ShapeDtypeStruct((b_pad, 2), jnp.float32),
        grid=grid,
        in_specs=[
            pl.BlockSpec((tm, obs_dim), lambda i: (i, 0)),
            pl.BlockSpec((tm, action_dim), lambda i: (i, 0)),
            # Weights/biases: constant block index -> stay VMEM-resident across the grid.
            pl.BlockSpec((obs_dim, H2), lambda i: (0, 0)),
            pl.BlockSpec((action_dim, H2), lambda i: (0, 0)),
            pl.BlockSpec((3, H2), lambda i: (0, 0)),
            pl.BlockSpec((H2, H2), lambda i: (0, 0)),
            pl.BlockSpec((H2, 2), lambda i: (0, 0)),
        ],
        out_specs=pl.BlockSpec((tm, 2), lambda i: (i, 0)),
        compiler_params=pltpu.CompilerParams(
            dimension_semantics=("parallel",)),  # 2 TCs on v7x; harmless elsewhere
    )(obs_p, act_p, w1_obs, w1_act, b_slab, w2_packed, w3_packed)

    q1 = q[:B, 0:1]
    q2 = q[:B, 1:2]
    return q1, q2


def _init_mlp_params(key, in_dim, hidden_dim):
    """Deterministic synthetic init (stand-in for utils.weight_init / orthogonal)."""
    k1, k2, k3 = jax.random.split(key, 3)
    scale1 = 1.0 / jnp.sqrt(in_dim)
    scale2 = 1.0 / jnp.sqrt(hidden_dim)
    return {
        "w1": jax.random.normal(k1, (in_dim, hidden_dim), jnp.float32) * scale1,
        "b1": jnp.zeros((1, hidden_dim), jnp.float32),
        "w2": jax.random.normal(k2, (hidden_dim, hidden_dim), jnp.float32) * scale2,
        "b2": jnp.zeros((1, hidden_dim), jnp.float32),
        "w3": jax.random.normal(k3, (hidden_dim, 1), jnp.float32) * scale2,
        "b3": jnp.zeros((1, 1), jnp.float32),
    }


def _reference_forward(obs, action, p1, p2):
    """Pure-JAX reference for correctness check (matches the PyTorch module)."""
    x = jnp.concatenate([obs, action], axis=-1)

    def mlp(p):
        h = jnp.maximum(x @ p["w1"] + p["b1"], 0.0)
        h = jnp.maximum(h @ p["w2"] + p["b2"], 0.0)
        return h @ p["w3"] + p["b3"]

    return mlp(p1), mlp(p2)


if __name__ == "__main__":
    # Small shapes consistent with the module: batch=8, obs_dim=12, action_dim=4,
    # hidden_dim=32, hidden_depth=2.
    batch, obs_dim, action_dim, hidden_dim = 8, 12, 4, 32

    key = jax.random.PRNGKey(0)
    k_obs, k_act, k_q1, k_q2 = jax.random.split(key, 4)

    obs = jax.random.normal(k_obs, (batch, obs_dim), jnp.float32)
    action = jax.random.normal(k_act, (batch, action_dim), jnp.float32)

    params_q1 = _init_mlp_params(k_q1, obs_dim + action_dim, hidden_dim)
    params_q2 = _init_mlp_params(k_q2, obs_dim + action_dim, hidden_dim)

    fwd = jax.jit(double_q_critic_forward)
    q1, q2 = fwd(obs, action, params_q1, params_q2)
    q1 = jax.block_until_ready(q1)
    q2 = jax.block_until_ready(q2)

    # Sanity check against pure-JAX reference.
    r1, r2 = _reference_forward(obs, action, params_q1, params_q2)
    assert q1.shape == (batch, 1) and q2.shape == (batch, 1)
    assert jnp.allclose(q1, r1, atol=1e-4, rtol=1e-4)
    assert jnp.allclose(q2, r2, atol=1e-4, rtol=1e-4)

    print("KERNEL_OK")
</pallas_src>

<mosaic_0001>
module attributes {stable_mosaic.version = 11 : i64} {
  func.func @_double_q_kernel(%arg0: i32, %arg1: memref<8x12xf32, #tpu.memory_space<vmem>>, %arg2: memref<8x4xf32, #tpu.memory_space<vmem>>, %arg3: memref<12x64xf32, #tpu.memory_space<vmem>>, %arg4: memref<4x64xf32, #tpu.memory_space<vmem>>, %arg5: memref<3x64xf32, #tpu.memory_space<vmem>>, %arg6: memref<64x64xf32, #tpu.memory_space<vmem>>, %arg7: memref<64x2xf32, #tpu.memory_space<vmem>>, %arg8: memref<8x2xf32, #tpu.memory_space<vmem>>) attributes {dimension_semantics = [#tpu.dimension_semantics<parallel>], iteration_bounds = array<i64: 1>, scalar_prefetch = 0 : i64, scratch_operands = 0 : i64, tpu.core_type = #tpu.core_type<tc>, window_params = [{transform_indices = @transform_0, window_bounds = array<i64: 8, 12>}, {transform_indices = @transform_1, window_bounds = array<i64: 8, 4>}, {pipeline_mode = #tpu.pipeline_mode<synchronous>, transform_indices = @transform_2, window_bounds = array<i64: 12, 64>}, {pipeline_mode = #tpu.pipeline_mode<synchronous>, transform_indices = @transform_3, window_bounds = array<i64: 4, 64>}, {pipeline_mode = #tpu.pipeline_mode<synchronous>, transform_indices = @transform_4, window_bounds = array<i64: 3, 64>}, {pipeline_mode = #tpu.pipeline_mode<synchronous>, transform_indices = @transform_5, window_bounds = array<i64: 64, 64>}, {pipeline_mode = #tpu.pipeline_mode<synchronous>, transform_indices = @transform_6, window_bounds = array<i64: 64, 2>}, {transform_indices = @transform_7, window_bounds = array<i64: 8, 2>}]} {
    %c0 = arith.constant 0 : index
    %c0_0 = arith.constant 0 : index
    %0 = vector.load %arg5[%c0, %c0_0] : memref<3x64xf32, #tpu.memory_space<vmem>>, vector<3x64xf32>
    %c0_1 = arith.constant 0 : index
    %c0_2 = arith.constant 0 : index
    %1 = vector.load %arg1[%c0_1, %c0_2] : memref<8x12xf32, #tpu.memory_space<vmem>>, vector<8x12xf32>
    %c0_3 = arith.constant 0 : index
    %c0_4 = arith.constant 0 : index
    %2 = vector.load %arg3[%c0_3, %c0_4] : memref<12x64xf32, #tpu.memory_space<vmem>>, vector<12x64xf32>
    %cst = arith.constant dense<0.000000e+00> : vector<8x64xf32>
    %3 = tpu.matmul %1, %2, %cst {dimension_numbers = #tpu.dot_dimension_numbers<[1], [0], [0], [1], [0, 0, 1, 1], [], []>} : vector<8x12xf32>, vector<12x64xf32>, vector<8x64xf32> -> vector<8x64xf32>
    %c0_5 = arith.constant 0 : index
    %c0_6 = arith.constant 0 : index
    %4 = vector.load %arg2[%c0_5, %c0_6] : memref<8x4xf32, #tpu.memory_space<vmem>>, vector<8x4xf32>
    %c0_7 = arith.constant 0 : index
    %c0_8 = arith.constant 0 : index
    %5 = vector.load %arg4[%c0_7, %c0_8] : memref<4x64xf32, #tpu.memory_space<vmem>>, vector<4x64xf32>
    %cst_9 = arith.constant dense<0.000000e+00> : vector<8x64xf32>
    %6 = tpu.matmul %4, %5, %cst_9 {dimension_numbers = #tpu.dot_dimension_numbers<[1], [0], [0], [1], [0, 0, 1, 1], [], []>} : vector<8x4xf32>, vector<4x64xf32>, vector<8x64xf32> -> vector<8x64xf32>
    %7 = arith.addf %3, %6 : vector<8x64xf32>
    %8 = vector.extract_strided_slice %0 {offsets = [0, 0], sizes = [1, 64], strides = [1, 1]} : vector<3x64xf32> to vector<1x64xf32>
    %9 = vector.broadcast %8 : vector<1x64xf32> to vector<8x64xf32>
    %10 = arith.addf %7, %9 : vector<8x64xf32>
    %cst_10 = arith.constant 0.000000e+00 : f32
    %11 = vector.broadcast %cst_10 : f32 to vector<8x64xf32>
    %12 = arith.maximumf %10, %11 : vector<8x64xf32>
    %c0_11 = arith.constant 0 : index
    %c0_12 = arith.constant 0 : index
    %13 = vector.load %arg6[%c0_11, %c0_12] : memref<64x64xf32, #tpu.memory_space<vmem>>, vector<64x64xf32>
    %cst_13 = arith.constant dense<0.000000e+00> : vector<8x64xf32>
    %14 = tpu.matmul %12, %13, %cst_13 {dimension_numbers = #tpu.dot_dimension_numbers<[1], [0], [0], [1], [0, 0, 1, 1], [], []>} : vector<8x64xf32>, vector<64x64xf32>, vector<8x64xf32> -> vector<8x64xf32>
    %15 = vector.extract_strided_slice %0 {offsets = [1, 0], sizes = [1, 64], strides = [1, 1]} : vector<3x64xf32> to vector<1x64xf32>
    %16 = vector.broadcast %15 : vector<1x64xf32> to vector<8x64xf32>
    %17 = arith.addf %14, %16 : vector<8x64xf32>
    %cst_14 = arith.constant 0.000000e+00 : f32
    %18 = vector.broadcast %cst_14 : f32 to vector<8x64xf32>
    %19 = arith.maximumf %17, %18 : vector<8x64xf32>
    %c0_15 = arith.constant 0 : index
    %c0_16 = arith.constant 0 : index
    %20 = vector.load %arg7[%c0_15, %c0_16] : memref<64x2xf32, #tpu.memory_space<vmem>>, vector<64x2xf32>
    %cst_17 = arith.constant dense<0.000000e+00> : vector<8x2xf32>
    %21 = tpu.matmul %19, %20, %cst_17 {dimension_numbers = #tpu.dot_dimension_numbers<[1], [0], [0], [1], [0, 0, 1, 1], [], []>} : vector<8x64xf32>, vector<64x2xf32>, vector<8x2xf32> -> vector<8x2xf32>
    %22 = vector.extract_strided_slice %0 {offsets = [2, 0], sizes = [1, 2], strides = [1, 1]} : vector<3x64xf32> to vector<1x2xf32>
    %23 = vector.broadcast %22 : vector<1x2xf32> to vector<8x2xf32>
    %24 = arith.addf %21, %23 : vector<8x2xf32>
    %c0_18 = arith.constant 0 : index
    %c0_19 = arith.constant 0 : index
    %25 = vector.load %arg8[%c0_18, %c0_19] : memref<8x2xf32, #tpu.memory_space<vmem>>, vector<8x2xf32>
    tpu.vector_store %arg8[%c0_18, %c0_19], %24 {strides = array<i32>} : memref<8x2xf32, #tpu.memory_space<vmem>>, vector<8x2xf32>,
    return
  }
  func.func @transform_0(%arg0: i32) -> (i32, i32) {
    %c0_i32 = arith.constant 0 : i32
    %c0_i32_0 = arith.constant 0 : i32
    return %arg0, %c0_i32 : i32, i32
  }
  func.func @transform_1(%arg0: i32) -> (i32, i32) {
    %c0_i32 = arith.constant 0 : i32
    %c0_i32_0 = arith.constant 0 : i32
    return %arg0, %c0_i32 : i32, i32
  }
  func.func @transform_2(%arg0: i32) -> (i32, i32) {
    %c0_i32 = arith.constant 0 : i32
    %c0_i32_0 = arith.constant 0 : i32
    %c0_i32_1 = arith.constant 0 : i32
    return %c0_i32, %c0_i32_0 : i32, i32
  }
  func.func @transform_3(%arg0: i32) -> (i32, i32) {
    %c0_i32 = arith.constant 0 : i32
    %c0_i32_0 = arith.constant 0 : i32
    %c0_i32_1 = arith.constant 0 : i32
    return %c0_i32, %c0_i32_0 : i32, i32
  }
  func.func @transform_4(%arg0: i32) -> (i32, i32) {
    %c0_i32 = arith.constant 0 : i32
    %c0_i32_0 = arith.constant 0 : i32
    %c0_i32_1 = arith.constant 0 : i32
    return %c0_i32, %c0_i32_0 : i32, i32
  }
  func.func @transform_5(%arg0: i32) -> (i32, i32) {
    %c0_i32 = arith.constant 0 : i32
    %c0_i32_0 = arith.constant 0 : i32
    %c0_i32_1 = arith.constant 0 : i32
    return %c0_i32, %c0_i32_0 : i32, i32
  }
  func.func @transform_6(%arg0: i32) -> (i32, i32) {
    %c0_i32 = arith.constant 0 : i32
    %c0_i32_0 = arith.constant 0 : i32
    %c0_i32_1 = arith.constant 0 : i32
    return %c0_i32, %c0_i32_0 : i32, i32
  }
  func.func @transform_7(%arg0: i32) -> (i32, i32) {
    %c0_i32 = arith.constant 0 : i32
    %c0_i32_0 = arith.constant 0 : i32
    return %arg0, %c0_i32 : i32, i32
  }
}

</mosaic_0001>

<bundles_post_ra>
// kernel: double_q_critic_forward.1
= control target key start
LH: loop header
LB: loop body
LE: loop exit
PB: predicated region body
PF: predicated region fallthrough
CT: control target
= control target key end

     0   :  { %vm36_vm0 = vcmask 1043456   ;;  %vm32_vm1 = vcmask 31744   ;;  %v452_v0 = vmov 0.0   ;;  %vm453_vm2 = vmmov 0   ;;  %s594_s3 = inlined_call_operand.vmem [shape: f32[4,64], index: 3, kind: input, shape index: {}]   ;;  %s595_s2 = inlined_call_operand.vmem [shape: f32[12,64], index: 2, kind: input, shape index: {}]   ;;  %s596_s1 = inlined_call_operand.vmem [shape: f32[8,4], index: 1, kind: input, shape index: {}]   ;;  %s597_s0 = inlined_call_operand.vmem [shape: f32[8,12], index: 0, kind: input, shape index: {}]   ;;  %s598_s5 = inlined_call_operand.vmem [shape: f32[64,64], index: 5, kind: input, shape index: {}]   ;;  %s599_s6 = inlined_call_operand.vmem [shape: f32[64,2], index: 6, kind: input, shape index: {}]   ;;  %s600_s4 = inlined_call_operand.vmem [shape: f32[3,64], index: 4, kind: input, shape index: {}]   ;;  %s601_s7 = inlined_call_operand.vmem [shape: f32[8,2], index: 7, kind: output, shape index: {}]  }
   0x1   :  { %400 = vmatprep.subr.mxu0 %v452_v0  ;;  %405 = vmatprep.subr.mxu1 %v452_v0  ;;  %v31_v1 = vld [vmem:[%s594_s3] sm:$0xf]  ;;  %v29_v2 = vld [vmem:[%s595_s2 + $0x8] sm:$0xf]  ;;  %vm110_vm3 = vcmask 97280   ;;  %v200_v6 = vld [vmem:[%s598_s5 + $0x38] sm:$0xff]  ;;  %v187_v19 = vlaneseq }
   0x2   :  { %v30_v3 = vld [vmem:[%s596_s1] sm:$0xff]  ;;  %401 = vmatpush3.msk.msra.mxu0 %vm36_vm0, %v31_v1  ;;  %402 = vmatprep.mubr.msk.f32.mxu0 %vm453_vm2, %v452_v0  ;;  %v199_v7 = vld [vmem:[%s598_s5 + $0x30] sm:$0xff]  ;;  %v198_v8 = vld [vmem:[%s598_s5 + $0x28] sm:$0xff]  ;;  %vm205_vm4 = vcmask 523264   ;;  %vm365_vm5 = vcmask 15360  }
   0x3   :  { %v28_v4 = vld [vmem:[%s595_s2] sm:$0xff]  ;;  %406 = vmatpush3.msk.msra.mxu1 %vm36_vm0, %v29_v2  ;;  %403 = vmatmul.mubr.msk.f32.vlgmr.msra.gmra.mxu0 %vm32_vm1, %v30_v3  ;;  %v196_v10 = vld [vmem:[%s598_s5 + $0x18] sm:$0xff]  ;;  %v195_v11 = vld [vmem:[%s598_s5 + $0x10] sm:$0xff]  ;;  %v188_v20 = vshrl.u32 %v187_v19, 7 }
   0x4   :  { %v27_v5 = vld [vmem:[%s597_s0] sm:$0xff]  ;;  %407 = vmatprep.subr.mxu1 %v452_v0  ;;  %409 = vmatprep.mubr.msk.f32.mxu1 %vm453_vm2, %v452_v0  ;;  %v194_v12 = vld [vmem:[%s598_s5 + $0x8] sm:$0xff]  ;;  %v287_v14 = vld [vmem:[%s599_s6 + $0x38] sm:$0xff] }
   0x5   :  { %408 = vmatpush3.msra.mxu1 %v28_v4  ;;  %412 = vmatprep.subr.mxu0 %v452_v0  ;;  %v197_v9 = vld [vmem:[%s598_s5 + $0x20] sm:$0xff]  ;;  %v286_v15 = vld [vmem:[%s599_s6 + $0x30] sm:$0xff]  ;;  %v285_v16 = vld [vmem:[%s599_s6 + $0x28] sm:$0xff]  ;;  %v189_v21 = vsub.s32 0, %v188_v20  ;;  %v203_v34 = vsub.s32 1, %v188_v20  ;;  %v290_v40 = vsub.s32 2, %v188_v20 }
   0x6   :  { %410 = vmatmul.mubr.msk.f32.vlgmr.msra.gmra.mxu1 %vm110_vm3, %v27_v5  ;;  %413 = vmatpush3.msra.mxu0 %v200_v6  ;;  %v193_v13 = vld [vmem:[%s598_s5] sm:$0xff]  ;;  %v283_v18 = vld [vmem:[%s599_s6 + $0x18] sm:$0xff]  ;;  %v282_v31 = vld [vmem:[%s599_s6 + $0x10] sm:$0xff] }
   0x7   :  { %414 = vmatprep.subr.mxu0 %v452_v0  ;;  %428 = vmatprep.mubr.msk.f32.mxu0 %vm453_vm2, %v452_v0  ;;  %v284_v17 = vld [vmem:[%s599_s6 + $0x20] sm:$0xff]  ;;  %v281_v32 = vld [vmem:[%s599_s6 + $0x8] sm:$0xff] }
   0x8   :  { %415 = vmatpush3.msra.mxu0 %v199_v7  ;;  %431 = vmatprep.subr.mxu1 %v452_v0  ;;  %v26_v22 = vld [vmem:[%s600_s4] sm:$0x7] }
   0x9   :  { %416 = vmatprep.subr.mxu0 %v452_v0  ;;  %447 = vmatprep.mubr.msk.f32.mxu1 %vm453_vm2, %v452_v0  ;;  %v190_v25 = vrot.slane %v26_v22, %v189_v21  ;;  %v280_v33 = vld [vmem:[%s599_s6] sm:$0xff]  ;;  %v204_v35 = vrot.slane %v26_v22, %v203_v34  ;;  %v291_v41 = vrot.slane %v26_v22, %v290_v40 }
   0xa   :  { %417 = vmatpush3.msra.mxu0 %v198_v8  ;;  %432 = vmatpush3.msra.mxu1 %v287_v14 }
   0xb   :  { %418 = vmatprep.subr.mxu0 %v452_v0  ;;  %433 = vmatprep.subr.mxu1 %v452_v0 }
   0xc   :  { %419 = vmatpush3.msra.mxu0 %v197_v9  ;;  %434 = vmatpush3.msra.mxu1 %v286_v15 }
   0xd   :  { %420 = vmatprep.subr.mxu0 %v452_v0  ;;  %435 = vmatprep.subr.mxu1 %v452_v0 }
   0xe   :  { %421 = vmatpush3.msra.mxu0 %v196_v10  ;;  %436 = vmatpush3.msra.mxu1 %v285_v16 }
   0xf   :  { %422 = vmatprep.subr.mxu0 %v452_v0  ;;  %437 = vmatprep.subr.mxu1 %v452_v0 }
  0x10   :  { %423 = vmatpush3.msra.mxu0 %v195_v11  ;;  %438 = vmatpush3.msra.mxu1 %v284_v17 }
  0x11   :  { %424 = vmatprep.subr.mxu0 %v452_v0  ;;  %439 = vmatprep.subr.mxu1 %v452_v0 }
  0x12   :  { %425 = vmatpush3.msra.mxu0 %v194_v12  ;;  %440 = vmatpush3.msra.mxu1 %v283_v18 }
  0x13   :  { %426 = vmatprep.subr.mxu0 %v452_v0  ;;  %441 = vmatprep.subr.mxu1 %v452_v0 }
  0x14   :  { %427 = vmatpush3.msra.mxu0 %v193_v13  ;;  %442 = vmatpush3.msra.mxu1 %v282_v31 }
  0x15   :  { %443 = vmatprep.subr.mxu1 %v452_v0 }
  0x16   :  { %444 = vmatpush3.msra.mxu1 %v281_v32 }
  0x17   :  { %445 = vmatprep.subr.mxu1 %v452_v0 }
  0x18   :  { %446 = vmatpush3.msra.mxu1 %v280_v33 }
  0xc3   :  { %v106_v23 = vpop.f32.mrf.mxu0 }
  0xc5   :  { %v404_v24 = vpop.f32.mrf.mxu0 }
  0xc6   :  { %v183_v26 = vpop.f32.mrf.mxu1 }
  0xc7   :  { %v184_v27 = vadd.f32 %v183_v26, %v106_v23 }
  0xc8   :  { %v411_v28 = vpop.f32.mrf.mxu1 }
  0xc9   :  { %v191_v29 = vadd.f32 %v190_v25, %v184_v27 }
  0xcb   :  { %v192_v30 = vmax.f32 %v191_v29, 0.0 }
  0xcd   :  { %429 = vmatmul.mubr.msk.f32.vlgmr.msra.gmra.mxu0 %vm205_vm4, %v192_v30 }
 0x18d   :  { %v275_v36 = vpop.f32.mrf.mxu0 }
 0x18e   :  { %v276_v37 = vadd.f32 %v275_v36, %v204_v35 }
 0x18f   :  { %v430_v38 = vpop.f32.mrf.mxu0 }
 0x190   :  { %v279_v39 = vmax.f32 %v276_v37, 0.0 }
 0x192   :  { %448 = vmatmul.mubr.msk.f32.vlgmr.msra.gmra.mxu1 %vm205_vm4, %v279_v39 }
 0x252   :  { %v361_v42 = vpop.f32.mrf.mxu1 }
 0x253   :  { %v362_v43 = vadd.f32 %v361_v42, %v291_v41 }
 0x254   :  { %v449_v44 = vpop.f32.mrf.mxu1 }
 0x255   :  { %366 = vst.msk [vmem:[%s601_s7] sm:$0xff] %vm365_vm5, %v362_v43 }

</bundles_post_ra>
